<compile_context>
chip_gen: v7x
topology: tpu7x:2x2x1
jax: 0.10.0
libtpu: 0.0.40
codegen_flags: <defaults>
</compile_context>

<pallas_src>
import math

import jax
import jax.numpy as jnp
from jax.experimental import pallas as pl
from jax.experimental.pallas import tpu as pltpu


def _round_up(n, m):
    return ((n + m - 1) // m) * m


def _pick_batch_tile(B, padded_row_bytes, target_bytes=4 << 20):
    """Batch tile from VMEM-*padded* bytes per batch row.

    Targets ~4 MiB per x block (double-buffered ~8 MiB: inside the default
    scoped VMEM limit on v5e/v6e/v7x), keeps the grid >= 4 when the batch
    allows (>= 2 blocks per TensorCore with megacore), keeps the tile
    sublane-aligned (multiple of 8) and never larger than the batch.
    """
    if B <= 8:
        return B                                      # one full-batch block
    bt = max(1, target_bytes // max(1, padded_row_bytes))
    bt = min(bt, -(-B // 4))                          # keep >= 4 grid steps
    bt = max(8, (int(bt) // 8) * 8)                   # sublane aligned
    return min(bt, (B // 8) * 8)                      # never exceed the batch


def _attention_kernel_folded(x_ref, wbd_ref, b_ref, rep_ref, pool_ref, o_ref):
    """Small-F path. x_ref: (bt, S*F) lane-dense.

    wbd_ref : (S*F, S)  block-diagonal copy of `weight` (per-step scores)
    b_ref   : (1, S)    bias
    rep_ref : (S, S*F)  0/1 matrix: repeat a[:, s] across that step's F lanes
    pool_ref: (S*F, F)  0/1 matrix: sum the weighted input over steps
    o_ref   : (bt, F)
    """
    x = x_ref[...]
    # Scores kept in a 2-D (bt, S) layout (S on lanes): one MXU matmul.
    eij = jnp.dot(x, wbd_ref[...], preferred_element_type=jnp.float32)
    eij = jnp.tanh(eij + b_ref[...])
    a = jnp.exp(eij)                                      # (bt, S)
    a = a / jnp.sum(a, axis=-1, keepdims=True) + 1e-10    # exact divide
    # Broadcast a over each step's F lanes (MXU), staying lane-dense.
    a_rep = jnp.dot(a.astype(x.dtype), rep_ref[...],
                    preferred_element_type=jnp.float32).astype(x.dtype)
    # Weighted input, then the sum over steps as one more MXU matmul.
    o_ref[...] = jnp.dot(x * a_rep, pool_ref[...],
                         preferred_element_type=jnp.float32).astype(o_ref.dtype)


def _attention_kernel_plain(x_ref, w_ref, b_ref, o_ref):
    """Lane-aligned-F path. x_ref: (bt, S, F) with F a multiple of 128."""
    x = x_ref[...]
    w = w_ref[...]                                        # (1, F)
    # Lane (F) reduce -> scores in a 2-D (bt, S) layout for tanh/exp/softmax.
    eij = jnp.sum(x * w[None, :, :], axis=-1).astype(jnp.float32)   # (bt, S)
    eij = jnp.tanh(eij + b_ref[...])
    a = jnp.exp(eij)
    a = a / jnp.sum(a, axis=-1, keepdims=True) + 1e-10    # exact divide
    # Broadcast back to (bt, S, 1) only for the final weighting.
    out = jnp.sum(x * a[:, :, None].astype(x.dtype), axis=1)        # (bt, F)
    o_ref[...] = out.astype(o_ref.dtype)


def attention_forward(x, weight, bias=None, *, batch_tile=None):
    """Additive attention pooling: x [B, S, F] -> [B, F]."""
    B, S, F = x.shape
    dtype = x.dtype
    itemsize = jnp.dtype(dtype).itemsize
    sublane = {4: 8, 2: 16, 1: 32}.get(itemsize, 8)

    w = weight.reshape(-1).astype(jnp.float32)            # (F,)
    if bias is None:
        bias = jnp.zeros((S,), jnp.float32)
    b2 = bias.reshape(1, S).astype(jnp.float32)

    compiler_params = pltpu.CompilerParams(dimension_semantics=("parallel",))

    # Small / lane-misaligned F: fold (S, F) into the lane axis so the x block
    # is lane-dense, and run the score / broadcast / pooling reductions on the
    # MXU against small precomputed 0/1 structure matrices.
    use_folded = (F % 128 != 0) and (S * F <= 4096)

    if use_folded:
        SF = S * F
        x2 = x.reshape(B, SF)                             # free reshape (contiguous)
        eye_s = jnp.eye(S, dtype=jnp.float32)
        w_bd = jnp.kron(eye_s, w.reshape(F, 1)).astype(dtype)               # (S*F, S)
        rep = jnp.kron(eye_s, jnp.ones((1, F), jnp.float32)).astype(dtype)  # (S, S*F)
        pool = jnp.kron(jnp.ones((S, 1), jnp.float32),
                        jnp.eye(F, dtype=jnp.float32)).astype(dtype)        # (S*F, F)

        padded_row_bytes = _round_up(SF, 128) * itemsize
        bt = batch_tile or _pick_batch_tile(B, padded_row_bytes)
        grid = (pl.cdiv(B, bt),)                          # ragged last block, no jnp.pad

        return pl.pallas_call(
            _attention_kernel_folded,
            out_shape=jax.ShapeDtypeStruct((B, F), dtype),
            grid_spec=pltpu.PrefetchScalarGridSpec(
                num_scalar_prefetch=0,
                grid=grid,
                in_specs=[
                    pl.BlockSpec((bt, SF), lambda i: (i, 0)),
                    pl.BlockSpec((SF, S), lambda i: (0, 0)),
                    pl.BlockSpec((1, S), lambda i: (0, 0)),
                    pl.BlockSpec((S, SF), lambda i: (0, 0)),
                    pl.BlockSpec((SF, F), lambda i: (0, 0)),
                ],
                out_specs=pl.BlockSpec((bt, F), lambda i: (i, 0)),
            ),
            compiler_params=compiler_params,
        )(x2, w_bd, b2, rep, pool)

    # F already lane-dense (multiple of 128): keep x as (B, S, F).
    w2 = w.reshape(1, F).astype(dtype)
    padded_row_bytes = _round_up(S, sublane) * _round_up(F, 128) * itemsize
    bt = batch_tile or _pick_batch_tile(B, padded_row_bytes)
    grid = (pl.cdiv(B, bt),)

    return pl.pallas_call(
        _attention_kernel_plain,
        out_shape=jax.ShapeDtypeStruct((B, F), dtype),
        grid_spec=pltpu.PrefetchScalarGridSpec(
            num_scalar_prefetch=0,
            grid=grid,
            in_specs=[
                pl.BlockSpec((bt, S, F), lambda i: (i, 0, 0)),
                pl.BlockSpec((1, F), lambda i: (0, 0)),
                pl.BlockSpec((1, S), lambda i: (0, 0)),
            ],
            out_specs=pl.BlockSpec((bt, F), lambda i: (i, 0)),
        ),
        compiler_params=compiler_params,
    )(x, w2, b2)


def attention_reference(x, weight, bias):
    """Pure-JAX reference (elementwise f32, no TPU matmul-precision caveats)."""
    xf = x.astype(jnp.float32)
    w = weight.reshape(1, 1, -1).astype(jnp.float32)
    eij = jnp.sum(xf * w, axis=-1) + bias.astype(jnp.float32)[None, :]
    a = jnp.exp(jnp.tanh(eij))
    a = a / jnp.sum(a, axis=1, keepdims=True) + 1e-10
    return jnp.sum(xf * a[:, :, None], axis=1).astype(x.dtype)


if __name__ == "__main__":
    key = jax.random.PRNGKey(0)
    k1, k2, k3, k4, k5 = jax.random.split(key, 5)

    # Primary check: module-like small shapes (feature_dim=32, step_dim=8).
    # Batch is NOT a multiple of the tile -> exercises the ragged last block
    # (remainder handled without any jnp.pad copy of x).
    B, S, F = 20, 8, 32
    x = jax.random.normal(k1, (B, S, F), dtype=jnp.float32)
    bound = math.sqrt(6.0 / (1 + F))            # xavier_uniform_ on (F, 1)
    weight = jax.random.uniform(k2, (F, 1), jnp.float32, -bound, bound)
    bias = 0.1 * jax.random.normal(k3, (S,), dtype=jnp.float32)

    out = jax.block_until_ready(attention_forward(x, weight, bias))
    assert out.shape == (B, F)
    ref = attention_reference(x, weight, bias)
    assert jnp.allclose(out, ref, atol=1e-4, rtol=1e-4), "folded-path mismatch"

    # Secondary check: lane-aligned feature_dim takes the plain (B, S, F) path.
    B2, S2, F2 = 16, 8, 128
    x2 = jax.random.normal(k4, (B2, S2, F2), dtype=jnp.float32)
    bound2 = math.sqrt(6.0 / (1 + F2))
    weight2 = jax.random.uniform(k5, (F2, 1), jnp.float32, -bound2, bound2)
    bias2 = jnp.zeros((S2,), jnp.float32)

    out2 = jax.block_until_ready(attention_forward(x2, weight2, bias2))
    ref2 = attention_reference(x2, weight2, bias2)
    assert jnp.allclose(out2, ref2, atol=1e-4, rtol=1e-4), "plain-path mismatch"

    print("KERNEL_OK")
</pallas_src>

<mosaic_0001>
module attributes {stable_mosaic.version = 11 : i64} {
  func.func @_attention_kernel_folded(%arg0: i32, %arg1: memref<8x256xf32, #tpu.memory_space<vmem>>, %arg2: memref<256x8xf32, #tpu.memory_space<vmem>>, %arg3: memref<1x8xf32, #tpu.memory_space<vmem>>, %arg4: memref<8x256xf32, #tpu.memory_space<vmem>>, %arg5: memref<256x32xf32, #tpu.memory_space<vmem>>, %arg6: memref<8x32xf32, #tpu.memory_space<vmem>>) attributes {dimension_semantics = [#tpu.dimension_semantics<parallel>], iteration_bounds = array<i64: 3>, scalar_prefetch = 0 : i64, scratch_operands = 0 : i64, tpu.core_type = #tpu.core_type<tc>, window_params = [{transform_indices = @transform_0, window_bounds = array<i64: 8, 256>}, {pipeline_mode = #tpu.pipeline_mode<synchronous>, transform_indices = @transform_1, window_bounds = array<i64: 256, 8>}, {pipeline_mode = #tpu.pipeline_mode<synchronous>, transform_indices = @transform_2, window_bounds = array<i64: 1, 8>}, {pipeline_mode = #tpu.pipeline_mode<synchronous>, transform_indices = @transform_3, window_bounds = array<i64: 8, 256>}, {pipeline_mode = #tpu.pipeline_mode<synchronous>, transform_indices = @transform_4, window_bounds = array<i64: 256, 32>}, {transform_indices = @transform_5, window_bounds = array<i64: 8, 32>}]} {
    %c0 = arith.constant 0 : index
    %c0_0 = arith.constant 0 : index
    %0 = vector.load %arg1[%c0, %c0_0] : memref<8x256xf32, #tpu.memory_space<vmem>>, vector<8x256xf32>
    %c0_1 = arith.constant 0 : index
    %c0_2 = arith.constant 0 : index
    %1 = vector.load %arg2[%c0_1, %c0_2] : memref<256x8xf32, #tpu.memory_space<vmem>>, vector<256x8xf32>
    %cst = arith.constant dense<0.000000e+00> : vector<8x8xf32>
    %2 = tpu.matmul %0, %1, %cst {dimension_numbers = #tpu.dot_dimension_numbers<[1], [0], [0], [1], [0, 0, 1, 1], [], []>} : vector<8x256xf32>, vector<256x8xf32>, vector<8x8xf32> -> vector<8x8xf32>
    %c0_3 = arith.constant 0 : index
    %c0_4 = arith.constant 0 : index
    %3 = vector.load %arg3[%c0_3, %c0_4] : memref<1x8xf32, #tpu.memory_space<vmem>>, vector<1x8xf32>
    %4 = vector.broadcast %3 : vector<1x8xf32> to vector<8x8xf32>
    %5 = arith.addf %2, %4 : vector<8x8xf32>
    %6 = math.tanh %5 : vector<8x8xf32>
    %7 = math.exp %6 : vector<8x8xf32>
    %cst_5 = arith.constant dense<0.000000e+00> : vector<8xf32>
    %8 = vector.multi_reduction <add>, %7, %cst_5 [1] : vector<8x8xf32> to vector<8xf32>
    %9 = vector.shape_cast %8 : vector<8xf32> to vector<8x1xf32>
    %10 = vector.broadcast %9 : vector<8x1xf32> to vector<8x8xf32>
    %11 = arith.divf %7, %10 : vector<8x8xf32>
    %cst_6 = arith.constant 1.000000e-10 : f32
    %12 = vector.broadcast %cst_6 : f32 to vector<8x8xf32>
    %13 = arith.addf %11, %12 : vector<8x8xf32>
    %c0_7 = arith.constant 0 : index
    %c0_8 = arith.constant 0 : index
    %14 = vector.load %arg4[%c0_7, %c0_8] : memref<8x256xf32, #tpu.memory_space<vmem>>, vector<8x256xf32>
    %cst_9 = arith.constant dense<0.000000e+00> : vector<8x256xf32>
    %15 = tpu.matmul %13, %14, %cst_9 {dimension_numbers = #tpu.dot_dimension_numbers<[1], [0], [0], [1], [0, 0, 1, 1], [], []>} : vector<8x8xf32>, vector<8x256xf32>, vector<8x256xf32> -> vector<8x256xf32>
    %16 = arith.mulf %0, %15 : vector<8x256xf32>
    %c0_10 = arith.constant 0 : index
    %c0_11 = arith.constant 0 : index
    %17 = vector.load %arg5[%c0_10, %c0_11] : memref<256x32xf32, #tpu.memory_space<vmem>>, vector<256x32xf32>
    %cst_12 = arith.constant dense<0.000000e+00> : vector<8x32xf32>
    %18 = tpu.matmul %16, %17, %cst_12 {dimension_numbers = #tpu.dot_dimension_numbers<[1], [0], [0], [1], [0, 0, 1, 1], [], []>} : vector<8x256xf32>, vector<256x32xf32>, vector<8x32xf32> -> vector<8x32xf32>
    %c0_13 = arith.constant 0 : index
    %c0_14 = arith.constant 0 : index
    %19 = vector.load %arg6[%c0_13, %c0_14] : memref<8x32xf32, #tpu.memory_space<vmem>>, vector<8x32xf32>
    tpu.vector_store %arg6[%c0_13, %c0_14], %18 {strides = array<i32>} : memref<8x32xf32, #tpu.memory_space<vmem>>, vector<8x32xf32>,
    return
  }
  func.func @transform_0(%arg0: i32) -> (i32, i32) {
    %c0_i32 = arith.constant 0 : i32
    %c0_i32_0 = arith.constant 0 : i32
    return %arg0, %c0_i32 : i32, i32
  }
  func.func @transform_1(%arg0: i32) -> (i32, i32) {
    %c0_i32 = arith.constant 0 : i32
    %c0_i32_0 = arith.constant 0 : i32
    %c0_i32_1 = arith.constant 0 : i32
    return %c0_i32, %c0_i32_0 : i32, i32
  }
  func.func @transform_2(%arg0: i32) -> (i32, i32) {
    %c0_i32 = arith.constant 0 : i32
    %c0_i32_0 = arith.constant 0 : i32
    %c0_i32_1 = arith.constant 0 : i32
    return %c0_i32, %c0_i32_0 : i32, i32
  }
  func.func @transform_3(%arg0: i32) -> (i32, i32) {
    %c0_i32 = arith.constant 0 : i32
    %c0_i32_0 = arith.constant 0 : i32
    %c0_i32_1 = arith.constant 0 : i32
    return %c0_i32, %c0_i32_0 : i32, i32
  }
  func.func @transform_4(%arg0: i32) -> (i32, i32) {
    %c0_i32 = arith.constant 0 : i32
    %c0_i32_0 = arith.constant 0 : i32
    %c0_i32_1 = arith.constant 0 : i32
    return %c0_i32, %c0_i32_0 : i32, i32
  }
  func.func @transform_5(%arg0: i32) -> (i32, i32) {
    %c0_i32 = arith.constant 0 : i32
    %c0_i32_0 = arith.constant 0 : i32
    return %arg0, %c0_i32 : i32, i32
  }
}

</mosaic_0001>

<bundles_post_ra>
// kernel: tpu_custom_call.1
= control target key start
LH: loop header
LB: loop body
LE: loop exit
PB: predicated region body
PF: predicated region fallthrough
CT: control target
= control target key end

     0   :  { %10 = vsyncpa [#allocation3], 0  ;;  %s1204_s0 = inlined_call_operand.vmem [shape: f32[20,256], index: 0, kind: input, shape index: {}]   ;;  %s1205_s1 = inlined_call_operand.vmem [shape: f32[256,8], index: 1, kind: input, shape index: {}]   ;;  %s1206_s2 = inlined_call_operand.vmem [shape: f32[1,8], index: 2, kind: input, shape index: {}]   ;;  %s1207_s3 = inlined_call_operand.vmem [shape: f32[8,256], index: 3, kind: input, shape index: {}]   ;;  %s1208_s4 = inlined_call_operand.vmem [shape: f32[256,32], index: 4, kind: input, shape index: {}]   ;;  %s1209_s5 = inlined_call_operand.hbm [shape: f32[20,32], index: 5, kind: output, shape index: {}]  }
   0x1   :  { %12 = vsyncpa [#allocation3 + $0x1], 0  ;;  %s889_s18 = smov 0   ;;  %s891_s19 = smov 0  }
   0x2   :  { %s893_s20 = smov 0   ;;  %s895_s21 = smov 0  }
   0x3 LB: > { %s910_s22 = sadd.s32 4294967295, %s855_s21   ;;  %s599_s23 = sadd.s32 4294967294, %s855_s21   ;;  %s855_s21 = sphi %s895_s21, %s1215_s21   ;;  %s851_s20 = sphi %s893_s20, %s1214_s20   ;;  %s847_s19 = sphi %s891_s19, %s1213_s19   ;;  %s843_s18 = sphi %s889_s18, %s1212_s18  }
   0x4   : > { %s914_s24 = sadd.s32 1, %s855_s21   ;;  %s135_s25 = sadd.s32 1, %s851_s20 }
   0x5   : > { %s132_s26 = ssub.s32 %s855_s21, %s914_s24  ;;  %p145_p0 = scmp.ne.s32.totalorder %s851_s20, %s847_s19 }
   0x6   : > { %p133_p1 = scmp.eq.s32.totalorder %s132_s26, 0  ;;  %p146_p2 = scmp.eq.s32.totalorder %s910_s22, 2 }
   0x7   : > { %p151_p3 = scmp.ne.s32.totalorder %s847_s19, %s843_s18  ;;  %p152_p4 = scmp.eq.s32.totalorder %s599_s23, 2 }
   0x8   : > { %s925_s27 = scalar_select %p133_p1, %s851_s20, %s135_s25  }
   0x9   : > { %p927_p5 = por %p146_p2, %p145_p0  ;;  %p931_p6 = por %p152_p4, %p151_p3 }
   0xa   : > { %p602_p7 = scmp.ge.s32.totalorder %s855_s21, 1  ;;  %p190_p8 = scmp.lt.s32.totalorder %s855_s21, 4 }
   0xc   : > { %p191_p9 = pnand %p602_p7, %p190_p8 }
   0xd   : > { %v241_v0 = vld [vmem:[%s1205_s1 + $0x80] sm:$0xff] (!%p191_p9)  ;;  %v242_v1 = vld [vmem:[%s1205_s1 + $0x88] sm:$0xff] (!%p191_p9)  ;;  %p218_p10 = scmp.lt.s32.totalorder (!%p191_p9), %s910_s22, 2  ;;  %v243_v5 = vld [vmem:[%s1205_s1 + $0x90] sm:$0xff] (!%p191_p9)  ;;  %vm337_vm0 = vcmask (!%p191_p9), 64512   ;;  %v857_v61 = vmov (!%p191_p9), 0.0  }
   0xe   : > { %194 = sbr.rel (%p191_p9) target bundleno = 892 (0x37c), region = 40  ;;  %v225_v2 = vld [vmem:[%s1205_s1] sm:$0xff] (!%p191_p9)  ;;  %v683_v3 = vpack.c.bf16 (!%p191_p9), %v242_v1, %v241_v0  ;;  %v226_v4 = vld [vmem:[%s1205_s1 + $0x8] sm:$0xff] (!%p191_p9)  ;;  %v244_v6 = vld [vmem:[%s1205_s1 + $0x98] sm:$0xff] (!%p191_p9)  ;;  %413 = vmatprep.mubr.f32.mxu1 (!%p191_p9), %v857_v61  ;;  %s215_s17 = sand.u32 (!%p191_p9), 1, %s847_s19   ;;  %vm524_vm1 = vcmask (!%p191_p9), 261120  }
   0xf   : > { %v685_v7 = vpack.c.bf16 (!%p191_p9), %v226_v4, %v225_v2  ;;  %v687_v8 = vpack.c.bf16 (!%p191_p9), %v244_v6, %v243_v5  ;;  %v227_v9 = vld [vmem:[%s1205_s1 + $0x10] sm:$0xff] (!%p191_p9)  ;;  %v228_v10 = vld [vmem:[%s1205_s1 + $0x18] sm:$0xff] (!%p191_p9)  ;;  %v245_v11 = vld [vmem:[%s1205_s1 + $0xa0] sm:$0xff] (!%p191_p9)  ;;  %s603_s23 = sshll.u32 (!%p191_p9), %s215_s17, 3  ;;  %s609_s25 = sshll.u32 (!%p191_p9), %s910_s22, 7 }
  0x10   : > { %684 = vmatprep.subr.bf16.mxu0 (!%p191_p9), %v683_v3  ;;  %v246_v12 = vld [vmem:[%s1205_s1 + $0xa8] sm:$0xff] (!%p191_p9)  ;;  %v689_v13 = vpack.c.bf16 (!%p191_p9), %v228_v10, %v227_v9  ;;  %v229_v15 = vld [vmem:[%s1205_s1 + $0x20] sm:$0xff] (!%p191_p9)  ;;  %v247_v17 = vld [vmem:[%s1205_s1 + $0xb0] sm:$0xff] (!%p191_p9)  ;;  %s217_s26 = scalar_lea.vmem (!%p191_p9), [#allocation2], %s603_s23  ;;  %s1162_s9 = scalar_lea.hbm (!%p191_p9), %s1209_s5, %s609_s25 }
  0x11   : > { %686 = vmatpush3.bf16.msra.mxu0 (!%p191_p9), %v685_v7  ;;  %v691_v14 = vpack.c.bf16 (!%p191_p9), %v246_v12, %v245_v11  ;;  %v230_v16 = vld [vmem:[%s1205_s1 + $0x28] sm:$0xff] (!%p191_p9)  ;;  %v248_v18 = vld [vmem:[%s1205_s1 + $0xb8] sm:$0xff] (!%p191_p9)  ;;  %v231_v21 = vld [vmem:[%s1205_s1 + $0x30] sm:$0xff] (!%p191_p9)  ;;  %s540_s6 = sshll.u32 (!%p191_p9), %s217_s26, 4  ;;  %s527_s11 = scalar_lea.sflag (!%p191_p9), [#allocation3], %s215_s17  ;;  %s1164_s6 = int_to_ptr.vmem [resolvable:$true] %s540_s6 }
  0x12   : > { %688 = vmatprep.subr.bf16.mxu0 (!%p191_p9), %v687_v8  ;;  %v693_v19 = vpack.c.bf16 (!%p191_p9), %v230_v16, %v229_v15  ;;  %v695_v20 = vpack.c.bf16 (!%p191_p9), %v248_v18, %v247_v17  ;;  %v232_v22 = vld [vmem:[%s1205_s1 + $0x38] sm:$0xff] (!%p191_p9)  ;;  %v249_v23 = vld [vmem:[%s1205_s1 + $0xc0] sm:$0xff] (!%p191_p9)  ;;  %v250_v24 = vld [vmem:[%s1205_s1 + $0xc8] sm:$0xff] (!%p191_p9)  ;;  %s793_s12 = scalar_lea.vmem (!%p191_p9), %s1164_s6, 128 }
  0x13   : > { %v697_v26 = vpack.c.bf16 (!%p191_p9), %v232_v22, %v231_v21  ;;  %v699_v27 = vpack.c.bf16 (!%p191_p9), %v250_v24, %v249_v23  ;;  %v233_v28 = vld [vmem:[%s1205_s1 + $0x40] sm:$0xff] (!%p191_p9)  ;;  %v234_v29 = vld [vmem:[%s1205_s1 + $0x48] sm:$0xff] (!%p191_p9)  ;;  %v251_v30 = vld [vmem:[%s1205_s1 + $0xd0] sm:$0xff] (!%p191_p9)  ;;  %p794_p11 = scmp.ne.s32.totalorder (!%p191_p9), %s1164_s6, %s793_s12 }
  0x14   : > { %v252_v31 = vld [vmem:[%s1205_s1 + $0xd8] sm:$0xff] (!%p191_p9)  ;;  %v701_v32 = vpack.c.bf16 (!%p191_p9), %v234_v29, %v233_v28  ;;  %v235_v34 = vld [vmem:[%s1205_s1 + $0x50] sm:$0xff] (!%p191_p9)  ;;  %v253_v36 = vld [vmem:[%s1205_s1 + $0xe0] sm:$0xff] (!%p191_p9) }
  0x15   : > { %s219_s7 = scalar_select %p218_p10, %s910_s22, 2  ;;  %690 = vmatpush3.bf16.msra.mxu0 %v689_v13  ;;  %v703_v33 = vpack.c.bf16 %v252_v31, %v251_v30  ;;  %v236_v35 = vld [vmem:[%s1205_s1 + $0x58] sm:$0xff]  ;;  %v254_v37 = vld [vmem:[%s1205_s1 + $0xe8] sm:$0xff]  ;;  %v237_v40 = vld [vmem:[%s1205_s1 + $0x60] sm:$0xff] }
  0x16   : > { %692 = vmatprep.subr.bf16.mxu0 %v691_v14  ;;  %v705_v38 = vpack.c.bf16 %v236_v35, %v235_v34  ;;  %v707_v39 = vpack.c.bf16 %v254_v37, %v253_v36  ;;  %v238_v41 = vld [vmem:[%s1205_s1 + $0x68] sm:$0xff]  ;;  %v255_v42 = vld [vmem:[%s1205_s1 + $0xf0] sm:$0xff]  ;;  %v256_v43 = vld [vmem:[%s1205_s1 + $0xf8] sm:$0xff]  ;;  %p795_p12 = pnand %p794_p11, %p927_p5  ;;  %s858_s22 = smov [#allocation2]  }
  0x17   : > { %s612_s10 = sshll.u32 %s219_s7, 4  ;;  %v709_v44 = vpack.c.bf16 %v238_v41, %v237_v40  ;;  %v711_v45 = vpack.c.bf16 %v256_v43, %v255_v42  ;;  %v239_v46 = vld [vmem:[%s1205_s1 + $0x70] sm:$0xff]  ;;  %v240_v47 = vld [vmem:[%s1205_s1 + $0x78] sm:$0xff]  ;;  %v606_v51 = vld [vmem:[%s1206_s2] ss:$0 sm:$0xff]  ;;  %s797_s13 = sshll.u32 %s858_s22, 4  ;;  %s798_s13 = int_to_ptr.vmem [resolvable:$false] %s797_s13 }
  0x18   : > { %s984_s30 = scalar_lea.vmem %s1204_s0, %s612_s10  ;;  %v713_v48 = vpack.c.bf16 %v240_v47, %v239_v46  ;;  %v345_v59 = vld [vmem:[%s1207_s3 + $0x8] sm:$0xff]  ;;  %v344_v60 = vld [vmem:[%s1207_s3] sm:$0xff]  ;;  %v440_v5 = vld [vmem:[%s1208_s4 + $0x90] sm:$0xff]  ;;  %p796_p13 = pneg %p795_p12 }
  0x19   : > { %v999_v25 = vld [vmem:[%s984_s30 + $0x8] sm:$0xff]  ;;  %694 = vmatpush3.bf16.msra.mxu0 %v693_v19  ;;  %v1045_v49 = vld [vmem:[%s984_s30] sm:$0xff]  ;;  %349 = vmatprep.subr.mxu1 %v345_v59  ;;  %v441_v6 = vld [vmem:[%s1208_s4 + $0x98] sm:$0xff]  ;;  %s799_s10 = scalar_lea.vmem %s798_s13, 256  ;;  %p800_p0 = scmp.lt.s32.totalorder %s1164_s6, %s798_s13 }
  0x1a   : > { %328 = vmatprep.mubr.f32.mxu0 %v999_v25  ;;  %696 = vmatprep.subr.bf16.mxu0 %v695_v20  ;;  %v438_v62 = vld [vmem:[%s1208_s4 + $0x80] sm:$0xff]  ;;  %v439_v63 = vld [vmem:[%s1208_s4 + $0x88] sm:$0xff]  ;;  %v719_v10 = vpack.c.bf16 %v441_v6, %v440_v5  ;;  %v424_v11 = vld [vmem:[%s1208_s4 + $0x10] sm:$0xff]  ;;  %p801_p1 = scmp.lt.s32.totalorder %s799_s10, %s793_s12 }
  0x1b   : > { %350 = vmatpush1.msra.mxu1 %v344_v60  ;;  %v715_v0 = vpack.c.bf16 %v439_v63, %v438_v62  ;;  %v422_v2 = vld [vmem:[%s1208_s4] sm:$0xff]  ;;  %v423_v3 = vld [vmem:[%s1208_s4 + $0x8] sm:$0xff]  ;;  %v425_v12 = vld [vmem:[%s1208_s4 + $0x18] sm:$0xff] }
  0x1c   : > { %v717_v8 = vpack.c.bf16 %v423_v3, %v422_v2  ;;  %v442_v13 = vld [vmem:[%s1208_s4 + $0xa0] sm:$0xff]  ;;  %v443_v14 = vld [vmem:[%s1208_s4 + $0xa8] sm:$0xff]  ;;  %v721_v15 = vpack.c.bf16 %v425_v12, %v424_v11  ;;  %v444_v19 = vld [vmem:[%s1208_s4 + $0xb0] sm:$0xff]  ;;  %p802_p2 = por %p801_p1, %p800_p0 }
  0x1d   : > { %698 = vmatpush3.bf16.msra.mxu0 %v697_v26  ;;  %716 = vmatprep.subr.bf16.mxu1 %v715_v0  ;;  %v723_v16 = vpack.c.bf16 %v443_v14, %v442_v13  ;;  %v426_v17 = vld [vmem:[%s1208_s4 + $0x20] sm:$0xff]  ;;  %v427_v18 = vld [vmem:[%s1208_s4 + $0x28] sm:$0xff]  ;;  %v445_v20 = vld [vmem:[%s1208_s4 + $0xb8] sm:$0xff] }
  0x1e   : > { %700 = vmatprep.subr.bf16.mxu0 %v699_v27  ;;  %v725_v21 = vpack.c.bf16 %v427_v18, %v426_v17  ;;  %v727_v22 = vpack.c.bf16 %v445_v20, %v444_v19  ;;  %v428_v23 = vld [vmem:[%s1208_s4 + $0x30] sm:$0xff]  ;;  %v429_v24 = vld [vmem:[%s1208_s4 + $0x38] sm:$0xff]  ;;  %v446_v26 = vld [vmem:[%s1208_s4 + $0xc0] sm:$0xff]  ;;  %p803_p3 = pnand %p802_p2, %p796_p13 }
  0x1f   : > { %v447_v27 = vld [vmem:[%s1208_s4 + $0xc8] sm:$0xff]  ;;  %v729_v28 = vpack.c.bf16 %v429_v24, %v428_v23  ;;  %v430_v30 = vld [vmem:[%s1208_s4 + $0x40] sm:$0xff]  ;;  %v432_v36 = vld [vmem:[%s1208_s4 + $0x50] sm:$0xff] }
  0x20   : > { %v731_v29 = vpack.c.bf16 %v447_v27, %v446_v26  ;;  %v431_v31 = vld [vmem:[%s1208_s4 + $0x48] sm:$0xff]  ;;  %v433_v37 = vld [vmem:[%s1208_s4 + $0x58] sm:$0xff]  ;;  %v434_v42 = vld [vmem:[%s1208_s4 + $0x60] sm:$0xff] }
  0x21   : > { %702 = vmatpush3.bf16.msra.mxu0 %v701_v32  ;;  %v448_v32 = vld [vmem:[%s1208_s4 + $0xd0] sm:$0xff]  ;;  %v733_v34 = vpack.c.bf16 %v431_v31, %v430_v30  ;;  %v737_v40 = vpack.c.bf16 %v433_v37, %v432_v36  ;;  %v435_v43 = vld [vmem:[%s1208_s4 + $0x68] sm:$0xff]  ;;  %v453_v46 = vld [vmem:[%s1208_s4 + $0xf8] sm:$0xff] }
  0x22   : > { %704 = vmatprep.subr.bf16.mxu0 %v703_v33  ;;  %v449_v33 = vld [vmem:[%s1208_s4 + $0xd8] sm:$0xff] }
  0x23   : > { %v735_v35 = vpack.c.bf16 %v449_v33, %v448_v32 }
  0x25   : > { %706 = vmatpush3.bf16.msra.mxu0 %v705_v38  ;;  %v450_v38 = vld [vmem:[%s1208_s4 + $0xe0] sm:$0xff] }
  0x26   : > { %708 = vmatprep.subr.bf16.mxu0 %v707_v39  ;;  %v451_v39 = vld [vmem:[%s1208_s4 + $0xe8] sm:$0xff] }
  0x27   : > { %v739_v41 = vpack.c.bf16 %v451_v39, %v450_v38 }
  0x29   : > { %710 = vmatpush3.bf16.msra.mxu0 %v709_v44  ;;  %v741_v44 = vpack.c.bf16 %v435_v43, %v434_v42 }
  0x2a   : > { %712 = vmatprep.subr.bf16.mxu0 %v711_v45  ;;  %v452_v45 = vld [vmem:[%s1208_s4 + $0xf0] sm:$0xff] }
  0x2b   : > { %v743_v47 = vpack.c.bf16 %v453_v46, %v452_v45 }
  0x2d   : > { %714 = vmatpush3.bf16.msra.mxu0 %v713_v48  ;;  %v436_v48 = vld [vmem:[%s1208_s4 + $0x70] sm:$0xff] }
  0x30   : > { %329 = vmatmul.mubr.f32.vlgmr.msra.gmra.mrb[0].mxu0 %v1045_v49 }
 0x103   : > { %v645_v50 = vpop.f32.mrb[0].mxu0 }
 0x104   : > { %v646_v52 = vpop.f32.mrb[1].mxu0 }
 0x105   : > { %v647_v53 = vadd.f32 %v646_v52, %v645_v50  ;;  %v437_v50 = vld [vmem:[%s1208_s4 + $0x78] sm:$0xff] }
 0x107   : > { %v331_v54 = vadd.f32 %v647_v53, %v606_v51  ;;  %v745_v51 = vpack.c.bf16 %v437_v50, %v436_v48 }
 0x109   : > { %787 = vtanh.f32 %v331_v54 }
 0x113   : > { %v788_v55 = vpop.eup %787 }
 0x114   : > { %v335_v56 = vmul.f32 1.442695, %v788_v55 }
 0x116   : > { %789 = vpow2.f32 %v335_v56 }
 0x120   : > { %v790_v57 = vpop.eup %789 }
 0x121   : > { %v338_v58 = vsel %vm337_vm0, %v790_v57, 0.0 }
 0x122   : > { %339 = vadd.xlane.f32.xlu0 %v338_v58 }
 0x1af   : > { %v340_v1 = vpop.xlane.xlu0 %339 }
 0x1b0   : > { %791 = vrcp.f32 %v340_v1 }
 0x1ba   : > { %v792_v4 = vpop.eup %791 }
 0x1bb   : > { %v342_v7 = vmul.f32 %v792_v4, %v790_v57 }
 0x1bd   : > { %v343_v9 = vadd.f32 1e-10, %v342_v7 }
 0x1bf   : > { %607 = vmatmul.mubr.msk.f32.vlgmr.msra.gmra.mrb[0].mxu1 %vm337_vm0, %v343_v9 }
 0x1c0   : > { %718 = vmatpush3.bf16.msra.mxu1 %v717_v8 }
 0x1c1   : > { %720 = vmatprep.subr.bf16.mxu1 %v719_v10 }
 0x1c4   : > { %722 = vmatpush3.bf16.msra.mxu1 %v721_v15 }
 0x1c5   : > { %724 = vmatprep.subr.bf16.mxu1 %v723_v16 }
 0x1c8   : > { %726 = vmatpush3.bf16.msra.mxu1 %v725_v21 }
 0x1c9   : > { %728 = vmatprep.subr.bf16.mxu1 %v727_v22 }
 0x1cc   : > { %730 = vmatpush3.bf16.msra.mxu1 %v729_v28 }
 0x1cd   : > { %732 = vmatprep.subr.bf16.mxu1 %v731_v29 }
 0x1d0   : > { %734 = vmatpush3.bf16.msra.mxu1 %v733_v34 }
 0x1d1   : > { %736 = vmatprep.subr.bf16.mxu1 %v735_v35 }
 0x1d4   : > { %738 = vmatpush3.bf16.msra.mxu1 %v737_v40 }
 0x1d5   : > { %740 = vmatprep.subr.bf16.mxu1 %v739_v41 }
 0x1d8   : > { %742 = vmatpush3.bf16.msra.mxu1 %v741_v44 }
 0x1d9   : > { %744 = vmatprep.subr.bf16.mxu1 %v743_v47 }
 0x1dc   : > { %746 = vmatpush3.bf16.msra.mxu1 %v745_v51 }
 0x292   : > { %v415_v52 = vpop.f32.mrb[0].mxu1 }
 0x293   : > { %v417_v53 = vpop.f32.mrb[1].mxu1  ;;  %v420_v55 = vmul.f32 %v415_v52, %v1045_v49 }
 0x294   : > { %v421_v54 = vmul.f32 %v417_v53, %v999_v25 }
 0x296   : > { %518 = vmatprep.mubr.f32.mxu1 %v421_v54 }
 0x297   : > { %519 = vmatmul.mubr.f32.vlgmr.msra.gmra.mrb[2].mxu1 %v420_v55 }
 0x36a   : > { %v680_v56 = vpop.f32.mrb[2].mxu1 }
 0x36b   : > { %v681_v57 = vpop.f32.mrb[3].mxu1 }
 0x36c   : > { %v682_v58 = vadd.f32 %v681_v57, %v680_v56 }
 0x36e   : > { %525 = vst.msk [vmem:[%s217_s26] sm:$0xff] %vm524_vm1, %v682_v58 }
 0x36f   : > { %806 = shalt.err (!%p803_p3)
}
 0x370   : > { %s807_s30 = scalar_lea.hbm %s1162_s9, 128  ;;  %s811_s16 = scalar_lea.hbm %s1209_s5, 384 }
 0x371   : > { %p808_p4 = scmp.ne.s32.totalorder %s1162_s9, %s807_s30  ;;  %p812_p9 = scmp.lt.u32.totalorder %s1162_s9, %s1209_s5 }
 0x372   : > { %p813_p10 = scmp.lt.u32.totalorder %s811_s16, %s807_s30  ;;  %p815_p12 = scmp.lt.u32.totalorder %s807_s30, %s1162_s9 }
 0x373   : > { %p809_p7 = pnand %p808_p4, %p927_p5 }
 0x374   : > { %p814_p11 = por %p813_p10, %p812_p9 }
 0x375   : > { %p810_p8 = pneg %p809_p7 }
 0x376   : > { %p816_p13 = por %p815_p12, %p814_p11 }
 0x378   : > { %p817_p0 = pnand %p816_p13, %p810_p8 }
 0x37a   : > { %820 = shalt.err (!%p817_p0)
}
 0x37b   : > { %747 = dma.vmem_to_hbm [thread:$0]  (%p927_p5), %s1164_s6, 128, %s1162_s9, %s527_s11  }
 0x37c PF: > { %p753_p1 = scmp.ge.s32.totalorder %s855_s21, 2  ;;  %s552_s25 = sand.u32 1, %s843_s18  }
 0x37d   : > { %s553_s26 = scalar_lea.sflag [#allocation3], %s552_s25 }
 0x37e   : > { %p750_p2 = pnand %p753_p1, %p931_p6 }
 0x380   : > { %838 = dma.done.wait (!%p750_p2), %s553_s26, 128  }
 0x381   : > { %840 = vsyncadd (!%p750_p2), %s553_s26, 4294967168  ;;  %p15_p3 = scmp.ge.s32.totalorder %s914_s24, 5   ;;  %s1212_s18 = smov %s847_s19 }
 0x382   : > { %s1213_s19 = smov %s851_s20  ;;  %s1214_s20 = smov %s925_s27 }
 0x383   : > { %s1215_s21 = smov %s914_s24  ;;  %17 = sbr.rel (!%p15_p3) target bundleno = 3 (0x3), region = 75 }
 0x38a   :  { %558 = vsyncpa [#allocation3], 1 }
 0x38b   :  { %560 = vsyncpa [#allocation3 + $0x1], 1 }

</bundles_post_ra>
